<compile_context>
chip_gen: v7x
topology: tpu7x:2x2x1
jax: 0.10.0
libtpu: 0.0.40
codegen_flags: <defaults>
</compile_context>

<pallas_src>
import functools

import jax
import jax.numpy as jnp
from jax import lax
from jax.experimental import pallas as pl
from jax.experimental.pallas import tpu as pltpu


def _loss_kernel(x_ref, w_ref, b_ref, y_ref, out_ref):
    # x_ref: (B, K)  bf16, resident          w_ref: (tn, K) bf16 contiguous row slab
    # b_ref: (1, tn) f32                     y_ref: (B, tn) bf16 targets (0/1 exact)
    # out_ref: (8, 128) f32 lane-dense per-tile partial (scalar broadcast)
    o = lax.dot_general(
        x_ref[...], w_ref[...],
        dimension_numbers=(((1,), (1,)), ((), ())),   # contract K; rhs kept in (N, K) layout
        preferred_element_type=jnp.float32,
    )
    o = o + b_ref[...]                                # broadcast bias over B sublanes
    y = y_ref[...].astype(jnp.float32)
    # Numerically stable BCE-with-logits (matches PyTorch):
    #   max(o, 0) - o*y + log(1 + exp(-|o|))
    l = jnp.maximum(o, 0.0) - o * y + jnp.log1p(jnp.exp(-jnp.abs(o)))
    # One reduce per (B, tn) tile (XLU/EUP work fully hidden under the W DMA).
    out_ref[...] = jnp.full(out_ref.shape, jnp.sum(l), jnp.float32)


@functools.partial(jax.jit, static_argnames=("tn",))
def xmlcnn_uturn_loss(x, w, b, y, *, tn=1024):
    """x: (B, K); w: (N, K) torch nn.Linear layout; b: (1, N); y: (B, N)."""
    B, K = x.shape
    N, Kw = w.shape
    assert Kw == K and y.shape == (B, N) and b.shape == (1, N)

    tn = min(tn, N)
    assert N % tn == 0 and tn % 128 == 0 and K % 128 == 0
    nj = N // tn

    # One-time cheap casts (outside the kernel's hot loop, inside the same jit):
    x_bf = x.astype(jnp.bfloat16)        # 16 KiB — negligible
    w_bf = w.astype(jnp.bfloat16)        # halves the dominant HBM stream
    y_bf = y.astype(jnp.bfloat16)        # 0/1 targets are exact in bf16
    b_f32 = b.astype(jnp.float32)

    # VMEM per step (bf16, tn=1024, K=512, B=8): 2 x 1 MiB W buffers + small
    # x/y/bias/out buffers ~= 2.2 MiB.  Explicit limit allows sweeping tn=2048.
    partials = pl.pallas_call(
        _loss_kernel,
        out_shape=jax.ShapeDtypeStruct((8, nj * 128), jnp.float32),
        grid_spec=pltpu.PrefetchScalarGridSpec(
            num_scalar_prefetch=0,
            grid=(nj,),
            in_specs=[
                pl.BlockSpec((B, K), lambda j: (0, 0)),    # x: resident, fetched once
                pl.BlockSpec((tn, K), lambda j: (j, 0)),   # W row slab: contiguous DMA
                pl.BlockSpec((1, tn), lambda j: (0, j)),   # bias slab (tiny)
                pl.BlockSpec((B, tn), lambda j: (0, j)),   # targets
            ],
            out_specs=pl.BlockSpec((8, 128), lambda j: (0, j)),
        ),
        compiler_params=pltpu.CompilerParams(
            dimension_semantics=("parallel",),
            vmem_limit_bytes=32 * 1024 * 1024,
        ),
    )(x_bf, w_bf, b_f32, y_bf)

    # Every element of output block j holds the same per-tile partial sum.
    per_tile = partials[0].reshape(nj, 128)[:, 0]
    return jnp.sum(per_tile) / jnp.float32(B)


def _reference_loss(x, w, b, y):
    """Pure-JAX reference; w in torch (N, K) layout."""
    o = x.astype(jnp.float32) @ w.astype(jnp.float32).T + b.astype(jnp.float32)
    yf = y.astype(jnp.float32)
    l = jnp.maximum(o, 0.0) - o * yf + jnp.log1p(jnp.exp(-jnp.abs(o)))
    return jnp.sum(l) / x.shape[0]


if __name__ == "__main__":
    # Shapes from the module spec: Linear(hidden_dims=512 -> y_dim=4096), small batch.
    B, hidden_dims, y_dim = 8, 512, 4096

    key = jax.random.PRNGKey(0)
    k_w, k_b, k_x, k_y = jax.random.split(key, 4)

    # torch nn.Linear weight layout: (out_features, in_features) = (y_dim, hidden).
    bound = 1.0 / jnp.sqrt(jnp.float32(hidden_dims))
    w = jax.random.uniform(k_w, (y_dim, hidden_dims), jnp.float32, -bound, bound)
    b = jax.random.uniform(k_b, (1, y_dim), jnp.float32, -bound, bound)

    x = jax.random.normal(k_x, (B, hidden_dims), jnp.float32)
    y = jax.random.bernoulli(k_y, 0.3, (B, y_dim)).astype(jnp.float32)

    loss = jax.block_until_ready(xmlcnn_uturn_loss(x, w, b, y))

    # Reference matched to the kernel's bf16 weight/activation streaming.
    ref_bf16 = jax.block_until_ready(_reference_loss(
        x.astype(jnp.bfloat16), w.astype(jnp.bfloat16), b, y))
    # Full-f32 PyTorch-equivalent reference (documents the bf16 deviation).
    ref_f32 = jax.block_until_ready(_reference_loss(x, w, b, y))

    assert jnp.allclose(loss, ref_bf16, rtol=1e-4, atol=1e-3), (loss, ref_bf16)
    assert jnp.allclose(loss, ref_f32, rtol=5e-3, atol=1e-2), (loss, ref_f32)
    print("KERNEL_OK")
</pallas_src>

<mosaic_0001>
module attributes {stable_mosaic.version = 11 : i64} {
  func.func @_loss_kernel(%arg0: i32, %arg1: memref<8x512xbf16, #tpu.memory_space<vmem>>, %arg2: memref<1024x512xbf16, #tpu.memory_space<vmem>>, %arg3: memref<1x1024xf32, #tpu.memory_space<vmem>>, %arg4: memref<8x1024xbf16, #tpu.memory_space<vmem>>, %arg5: memref<8x128xf32, #tpu.memory_space<vmem>>) attributes {dimension_semantics = [#tpu.dimension_semantics<parallel>], iteration_bounds = array<i64: 4>, scalar_prefetch = 0 : i64, scratch_operands = 0 : i64, tpu.core_type = #tpu.core_type<tc>, window_params = [{pipeline_mode = #tpu.pipeline_mode<synchronous>, transform_indices = @transform_0, window_bounds = array<i64: 8, 512>}, {transform_indices = @transform_1, window_bounds = array<i64: 1024, 512>}, {transform_indices = @transform_2, window_bounds = array<i64: 1, 1024>}, {transform_indices = @transform_3, window_bounds = array<i64: 8, 1024>}, {transform_indices = @transform_4, window_bounds = array<i64: 8, 128>}]} {
    %c0 = arith.constant 0 : index
    %c0_0 = arith.constant 0 : index
    %0 = vector.load %arg1[%c0, %c0_0] : memref<8x512xbf16, #tpu.memory_space<vmem>>, vector<8x512xbf16>
    %c0_1 = arith.constant 0 : index
    %c0_2 = arith.constant 0 : index
    %1 = vector.load %arg2[%c0_1, %c0_2] : memref<1024x512xbf16, #tpu.memory_space<vmem>>, vector<1024x512xbf16>
    %cst = arith.constant dense<0.000000e+00> : vector<8x1024xf32>
    %2 = tpu.matmul %0, %1, %cst {dimension_numbers = #tpu.dot_dimension_numbers<[1], [1], [0], [0], [0, 0, 1, 0], [], []>} : vector<8x512xbf16>, vector<1024x512xbf16>, vector<8x1024xf32> -> vector<8x1024xf32>
    %c0_3 = arith.constant 0 : index
    %c0_4 = arith.constant 0 : index
    %3 = vector.load %arg3[%c0_3, %c0_4] : memref<1x1024xf32, #tpu.memory_space<vmem>>, vector<1x1024xf32>
    %4 = vector.broadcast %3 : vector<1x1024xf32> to vector<8x1024xf32>
    %5 = arith.addf %2, %4 : vector<8x1024xf32>
    %c0_5 = arith.constant 0 : index
    %c0_6 = arith.constant 0 : index
    %6 = vector.load %arg4[%c0_5, %c0_6] : memref<8x1024xbf16, #tpu.memory_space<vmem>>, vector<8x1024xbf16>
    %7 = arith.extf %6 : vector<8x1024xbf16> to vector<8x1024xf32>
    %cst_7 = arith.constant 0.000000e+00 : f32
    %8 = vector.broadcast %cst_7 : f32 to vector<8x1024xf32>
    %9 = arith.maximumf %5, %8 : vector<8x1024xf32>
    %10 = arith.mulf %5, %7 : vector<8x1024xf32>
    %11 = arith.subf %9, %10 : vector<8x1024xf32>
    %12 = math.absf %5 : vector<8x1024xf32>
    %cst_8 = arith.constant 0.000000e+00 : f32
    %13 = vector.broadcast %cst_8 : f32 to vector<8x1024xf32>
    %14 = arith.subf %13, %12 : vector<8x1024xf32>
    %15 = math.exp %14 : vector<8x1024xf32>
    %16 = math.log1p %15 : vector<8x1024xf32>
    %17 = arith.addf %11, %16 : vector<8x1024xf32>
    %18 = vector.shape_cast %17 : vector<8x1024xf32> to vector<1x8x1024xf32>
    %cst_9 = arith.constant dense<0.000000e+00> : vector<1xf32>
    %19 = vector.multi_reduction <add>, %18, %cst_9 [1, 2] : vector<1x8x1024xf32> to vector<1xf32>
    %20 = vector.shape_cast %19 : vector<1xf32> to vector<1x1x1xf32>
    %21 = vector.extract %20[0, 0, 0] : f32 from vector<1x1x1xf32>
    %22 = vector.broadcast %21 : f32 to vector<8x128xf32>
    %c0_10 = arith.constant 0 : index
    %c0_11 = arith.constant 0 : index
    %23 = vector.load %arg5[%c0_10, %c0_11] : memref<8x128xf32, #tpu.memory_space<vmem>>, vector<8x128xf32>
    tpu.vector_store %arg5[%c0_10, %c0_11], %22 {strides = array<i32>} : memref<8x128xf32, #tpu.memory_space<vmem>>, vector<8x128xf32>,
    return
  }
  func.func @transform_0(%arg0: i32) -> (i32, i32) {
    %c0_i32 = arith.constant 0 : i32
    %c0_i32_0 = arith.constant 0 : i32
    %c0_i32_1 = arith.constant 0 : i32
    return %c0_i32, %c0_i32_0 : i32, i32
  }
  func.func @transform_1(%arg0: i32) -> (i32, i32) {
    %c0_i32 = arith.constant 0 : i32
    %c0_i32_0 = arith.constant 0 : i32
    return %arg0, %c0_i32 : i32, i32
  }
  func.func @transform_2(%arg0: i32) -> (i32, i32) {
    %c0_i32 = arith.constant 0 : i32
    %c0_i32_0 = arith.constant 0 : i32
    return %c0_i32, %arg0 : i32, i32
  }
  func.func @transform_3(%arg0: i32) -> (i32, i32) {
    %c0_i32 = arith.constant 0 : i32
    %c0_i32_0 = arith.constant 0 : i32
    return %c0_i32, %arg0 : i32, i32
  }
  func.func @transform_4(%arg0: i32) -> (i32, i32) {
    %c0_i32 = arith.constant 0 : i32
    %c0_i32_0 = arith.constant 0 : i32
    return %c0_i32, %arg0 : i32, i32
  }
}

</mosaic_0001>

<bundles_post_ra>
// kernel: xmlcnn_uturn_loss.1
= control target key start
LH: loop header
LB: loop body
LE: loop exit
PB: predicated region body
PF: predicated region fallthrough
CT: control target
= control target key end

     0   :  { %s3166_s15 = smov 0   ;;  %s3581_s0 = inlined_call_operand.vmem [shape: bf16[8,512], index: 0, kind: input, shape index: {}]   ;;  %s3582_s1 = inlined_call_operand.vmem [shape: bf16[4096,512], index: 1, kind: input, shape index: {}]   ;;  %s3583_s2 = inlined_call_operand.vmem [shape: f32[1,4096], index: 2, kind: input, shape index: {}]   ;;  %s3584_s3 = inlined_call_operand.vmem [shape: bf16[8,4096], index: 3, kind: input, shape index: {}]   ;;  %s3585_s4 = inlined_call_operand.vmem [shape: f32[8,512], index: 4, kind: output, shape index: {}]  }
   0x1 LB: > { %s3172_s16 = sadd.s32 4294967295, %s3139_s15   ;;  %p2408_p0 = scmp.ge.s32.totalorder %s3139_s15, 1  ;;  %s3139_s15 = sphi %s3166_s15, %s14_s15  }
   0x2   : > { %p185_p1 = scmp.lt.s32.totalorder %s3139_s15, 5 }
   0x4   : > { %p186_p2 = pnand %p2408_p0, %p185_p1 }
   0x5   : > { %s2409_s17 = sshll.u32 (!%p186_p2), %s3172_s16, 7  ;;  %v3180_v0 = vld [vmem:[%s3581_s0] sm:$0xff] (!%p186_p2)  ;;  %s2412_s26 = sshll.u32 (!%p186_p2), %s3172_s16, 3 }
   0x6   : > { %189 = sbr.rel (%p186_p2) target bundleno = 992 (0x3e0), region = 36  ;;  %p221_p3 = scmp.lt.s32.totalorder (!%p186_p2), %s2409_s17, 511  ;;  %v3184_v1 = vcombine.high (!%p186_p2), %v3180_v0, %v3180_v0 }
   0x7   : > { %p228_p4 = scmp.lt.s32.totalorder (!%p186_p2), %s2412_s26, 31  ;;  %p238_p5 = scmp.lt.s32.totalorder (!%p186_p2), %s3172_s16, 3 }
   0x8   : > { %1868 = vmatprep.mubr.bf16.mxu0 (!%p186_p2), %v3184_v1  ;;  %1950 = vmatprep.mubr.bf16.mxu1 (!%p186_p2), %v3184_v1 }
   0xd   : > { %s3587_s17 = smov (!%p221_p3, %s2409_s17), 511  ;;  %s3589_s26 = smov (!%p228_p4, %s2412_s26), 31 }
   0xe   : > { %s2678_s20 = sshll.u32 %s3587_s17, 4  ;;  %s230_s29 = scalar_lea.vmem %s3583_s2, %s3589_s26 }
   0xf   : > { %s3189_s23 = scalar_lea.vmem %s3582_s1, %s2678_s20  ;;  %s2414_s30 = sshll.u32 %s3589_s26, 2 }
  0x10   : > { %v2713_v2 = vld [vmem:[%s3189_s23 + $0x4] ss:$16 sps:$4 sm:$0xff]   ;;  %v2717_v4 = vld [vmem:[%s3189_s23] ss:$16 sps:$4 sm:$0xff]   ;;  %s3503_s7 = scalar_lea.vmem %s3584_s3, %s2414_s30  ;;  %s3591_s16 = smov (!%p238_p5, %s3172_s16), 3 }
  0x11   : > { %v2715_v3 = vld [vmem:[%s3189_s23 + $0x204] ss:$16 sps:$4 sm:$0xff]   ;;  %1836 = vmatprep.subr.bf16.mxu0 %v2713_v2  ;;  %v2718_v5 = vld [vmem:[%s3189_s23 + $0x200] ss:$16 sps:$4 sm:$0xff]   ;;  %s2415_s8 = sshll.u32 %s3591_s16, 3 }
  0x12   : > { %1918 = vmatprep.subr.bf16.mxu1 %v2715_v3  ;;  %v2719_v6 = vld [vmem:[%s3189_s23 + $0x24] ss:$16 sps:$4 sm:$0xff]   ;;  %1837 = vmatpush1.bf16.xpose.msra.mxu0 %v2717_v4  ;;  %v2723_v8 = vld [vmem:[%s3189_s23 + $0x20] ss:$16 sps:$4 sm:$0xff]   ;;  %v2812_v4 = vld [vmem:[%s3189_s23 + $0xc] ss:$16 sps:$4 sm:$0xff]   ;;  %s241_s11 = scalar_lea.vmem %s3585_s4, %s2415_s8 }
  0x13   : > { %1919 = vmatpush1.bf16.xpose.msra.mxu1 %v2718_v5  ;;  %v2721_v7 = vld [vmem:[%s3189_s23 + $0x224] ss:$16 sps:$4 sm:$0xff]   ;;  %1838 = vmatprep.subr.bf16.mxu0 %v2719_v6  ;;  %v2724_v9 = vld [vmem:[%s3189_s23 + $0x220] ss:$16 sps:$4 sm:$0xff]   ;;  %v2815_v5 = vld [vmem:[%s3189_s23 + $0x20c] ss:$16 sps:$4 sm:$0xff]  }
  0x14   : > { %1920 = vmatprep.subr.bf16.mxu1 %v2721_v7  ;;  %v2725_v10 = vld [vmem:[%s3189_s23 + $0x44] ss:$16 sps:$4 sm:$0xff]   ;;  %v2729_v12 = vld [vmem:[%s3189_s23 + $0x40] ss:$16 sps:$4 sm:$0xff]   ;;  %v3262_v6 = vld [vmem:[%s3581_s0 + $0x8] sm:$0xff]  ;;  %v3266_v7 = vcombine.low %v3180_v0, %v3180_v0 }
  0x15   : > { %v2727_v11 = vld [vmem:[%s3189_s23 + $0x244] ss:$16 sps:$4 sm:$0xff]   ;;  %v2730_v13 = vld [vmem:[%s3189_s23 + $0x240] ss:$16 sps:$4 sm:$0xff]   ;;  %v2817_v0 = vld [vmem:[%s3189_s23 + $0x28] ss:$16 sps:$4 sm:$0xff]  }
  0x16   : > { %v2731_v14 = vld [vmem:[%s3189_s23 + $0x64] ss:$16 sps:$4 sm:$0xff]   ;;  %v2735_v16 = vld [vmem:[%s3189_s23 + $0x60] ss:$16 sps:$4 sm:$0xff]  }
  0x17   : > { %v2733_v15 = vld [vmem:[%s3189_s23 + $0x264] ss:$16 sps:$4 sm:$0xff]   ;;  %v2736_v17 = vld [vmem:[%s3189_s23 + $0x260] ss:$16 sps:$4 sm:$0xff]  }
  0x18   : > { %v2737_v18 = vld [vmem:[%s3189_s23 + $0x84] ss:$16 sps:$4 sm:$0xff]   ;;  %v2741_v20 = vld [vmem:[%s3189_s23 + $0x80] ss:$16 sps:$4 sm:$0xff]  }
  0x19   : > { %v2739_v19 = vld [vmem:[%s3189_s23 + $0x284] ss:$16 sps:$4 sm:$0xff]   ;;  %v2742_v21 = vld [vmem:[%s3189_s23 + $0x280] ss:$16 sps:$4 sm:$0xff]  }
  0x1a   : > { %1839 = vmatpush1.bf16.xpose.msra.mxu0 %v2723_v8  ;;  %v2743_v22 = vld [vmem:[%s3189_s23 + $0xa4] ss:$16 sps:$4 sm:$0xff]   ;;  %v2747_v24 = vld [vmem:[%s3189_s23 + $0xa0] ss:$16 sps:$4 sm:$0xff]   ;;  %v2810_v8 = vld [vmem:[%s3189_s23 + $0x8] ss:$16 sps:$4 sm:$0xff]  }
  0x1b   : > { %1921 = vmatpush1.bf16.xpose.msra.mxu1 %v2724_v9  ;;  %1840 = vmatprep.subr.bf16.mxu0 %v2725_v10  ;;  %v2745_v23 = vld [vmem:[%s3189_s23 + $0x2a4] ss:$16 sps:$4 sm:$0xff]   ;;  %v2748_v25 = vld [vmem:[%s3189_s23 + $0x2a0] ss:$16 sps:$4 sm:$0xff]   ;;  %v2813_v9 = vld [vmem:[%s3189_s23 + $0x208] ss:$16 sps:$4 sm:$0xff]  }
  0x1c   : > { %1922 = vmatprep.subr.bf16.mxu1 %v2727_v11  ;;  %v2749_v26 = vld [vmem:[%s3189_s23 + $0xc4] ss:$16 sps:$4 sm:$0xff]   ;;  %v2753_v28 = vld [vmem:[%s3189_s23 + $0xc0] ss:$16 sps:$4 sm:$0xff]   ;;  %v2819_v10 = vld [vmem:[%s3189_s23 + $0x2c] ss:$16 sps:$4 sm:$0xff]  }
  0x1d   : > { %v2751_v27 = vld [vmem:[%s3189_s23 + $0x2c4] ss:$16 sps:$4 sm:$0xff]   ;;  %v2754_v29 = vld [vmem:[%s3189_s23 + $0x2c0] ss:$16 sps:$4 sm:$0xff]   ;;  %v2822_v11 = vld [vmem:[%s3189_s23 + $0x22c] ss:$16 sps:$4 sm:$0xff]  }
  0x1e   : > { %v2755_v30 = vld [vmem:[%s3189_s23 + $0xe4] ss:$16 sps:$4 sm:$0xff]   ;;  %v2759_v32 = vld [vmem:[%s3189_s23 + $0xe0] ss:$16 sps:$4 sm:$0xff]  }
  0x1f   : > { %v2757_v31 = vld [vmem:[%s3189_s23 + $0x2e4] ss:$16 sps:$4 sm:$0xff]   ;;  %v2760_v33 = vld [vmem:[%s3189_s23 + $0x2e0] ss:$16 sps:$4 sm:$0xff]  }
  0x20   : > { %v2761_v34 = vld [vmem:[%s3189_s23 + $0x104] ss:$16 sps:$4 sm:$0xff]   ;;  %v2765_v36 = vld [vmem:[%s3189_s23 + $0x100] ss:$16 sps:$4 sm:$0xff]  }
  0x21   : > { %v2763_v35 = vld [vmem:[%s3189_s23 + $0x304] ss:$16 sps:$4 sm:$0xff]   ;;  %v2766_v37 = vld [vmem:[%s3189_s23 + $0x300] ss:$16 sps:$4 sm:$0xff]  }
  0x22   : > { %1841 = vmatpush1.bf16.xpose.msra.mxu0 %v2729_v12  ;;  %v2767_v38 = vld [vmem:[%s3189_s23 + $0x124] ss:$16 sps:$4 sm:$0xff]   ;;  %v2771_v40 = vld [vmem:[%s3189_s23 + $0x120] ss:$16 sps:$4 sm:$0xff]   ;;  %v3274_v12 = vcombine.high %v3262_v6, %v3262_v6 }
  0x23   : > { %1923 = vmatpush1.bf16.xpose.msra.mxu1 %v2730_v13  ;;  %1842 = vmatprep.subr.bf16.mxu0 %v2731_v14  ;;  %v2769_v39 = vld [vmem:[%s3189_s23 + $0x324] ss:$16 sps:$4 sm:$0xff]   ;;  %v2772_v41 = vld [vmem:[%s3189_s23 + $0x320] ss:$16 sps:$4 sm:$0xff]   ;;  %v2820_v13 = vld [vmem:[%s3189_s23 + $0x228] ss:$16 sps:$4 sm:$0xff]  }
  0x24   : > { %1924 = vmatprep.subr.bf16.mxu1 %v2733_v15  ;;  %v2773_v42 = vld [vmem:[%s3189_s23 + $0x144] ss:$16 sps:$4 sm:$0xff]   ;;  %v2777_v44 = vld [vmem:[%s3189_s23 + $0x140] ss:$16 sps:$4 sm:$0xff]   ;;  %v2825_v14 = vld [vmem:[%s3189_s23 + $0x4c] ss:$16 sps:$4 sm:$0xff]  }
  0x25   : > { %v2775_v43 = vld [vmem:[%s3189_s23 + $0x344] ss:$16 sps:$4 sm:$0xff]   ;;  %v2778_v45 = vld [vmem:[%s3189_s23 + $0x340] ss:$16 sps:$4 sm:$0xff]   ;;  %v2828_v15 = vld [vmem:[%s3189_s23 + $0x24c] ss:$16 sps:$4 sm:$0xff]  }
  0x26   : > { %v2779_v46 = vld [vmem:[%s3189_s23 + $0x164] ss:$16 sps:$4 sm:$0xff]   ;;  %v2783_v48 = vld [vmem:[%s3189_s23 + $0x160] ss:$16 sps:$4 sm:$0xff]  }
  0x27   : > { %v2781_v47 = vld [vmem:[%s3189_s23 + $0x364] ss:$16 sps:$4 sm:$0xff]   ;;  %v2784_v49 = vld [vmem:[%s3189_s23 + $0x360] ss:$16 sps:$4 sm:$0xff]  }
  0x28   : > { %v2785_v50 = vld [vmem:[%s3189_s23 + $0x184] ss:$16 sps:$4 sm:$0xff]   ;;  %v2789_v52 = vld [vmem:[%s3189_s23 + $0x180] ss:$16 sps:$4 sm:$0xff]  }
  0x29   : > { %v2787_v51 = vld [vmem:[%s3189_s23 + $0x384] ss:$16 sps:$4 sm:$0xff]   ;;  %v2790_v53 = vld [vmem:[%s3189_s23 + $0x380] ss:$16 sps:$4 sm:$0xff]  }
  0x2a   : > { %1843 = vmatpush1.bf16.xpose.msra.mxu0 %v2735_v16  ;;  %v2791_v54 = vld [vmem:[%s3189_s23 + $0x1a4] ss:$16 sps:$4 sm:$0xff]   ;;  %v2795_v56 = vld [vmem:[%s3189_s23 + $0x1a0] ss:$16 sps:$4 sm:$0xff]   ;;  %v2823_v16 = vld [vmem:[%s3189_s23 + $0x48] ss:$16 sps:$4 sm:$0xff]  }
  0x2b   : > { %1925 = vmatpush1.bf16.xpose.msra.mxu1 %v2736_v17  ;;  %1844 = vmatprep.subr.bf16.mxu0 %v2737_v18  ;;  %v2793_v55 = vld [vmem:[%s3189_s23 + $0x3a4] ss:$16 sps:$4 sm:$0xff]   ;;  %v2796_v57 = vld [vmem:[%s3189_s23 + $0x3a0] ss:$16 sps:$4 sm:$0xff]   ;;  %v2826_v17 = vld [vmem:[%s3189_s23 + $0x248] ss:$16 sps:$4 sm:$0xff]  }
  0x2c   : > { %1926 = vmatprep.subr.bf16.mxu1 %v2739_v19  ;;  %v2797_v58 = vld [vmem:[%s3189_s23 + $0x1c4] ss:$16 sps:$4 sm:$0xff]   ;;  %v2801_v60 = vld [vmem:[%s3189_s23 + $0x1c0] ss:$16 sps:$4 sm:$0xff]   ;;  %v2831_v18 = vld [vmem:[%s3189_s23 + $0x6c] ss:$16 sps:$4 sm:$0xff]  }
  0x2d   : > { %v2799_v59 = vld [vmem:[%s3189_s23 + $0x3c4] ss:$16 sps:$4 sm:$0xff]   ;;  %v2802_v61 = vld [vmem:[%s3189_s23 + $0x3c0] ss:$16 sps:$4 sm:$0xff]   ;;  %v2834_v19 = vld [vmem:[%s3189_s23 + $0x26c] ss:$16 sps:$4 sm:$0xff]  }
  0x2e   : > { %v2803_v62 = vld [vmem:[%s3189_s23 + $0x1e4] ss:$16 sps:$4 sm:$0xff]   ;;  %v2807_v2 = vld [vmem:[%s3189_s23 + $0x1e0] ss:$16 sps:$4 sm:$0xff]  }
  0x2f   : > { %v2805_v63 = vld [vmem:[%s3189_s23 + $0x3e4] ss:$16 sps:$4 sm:$0xff]   ;;  %v2808_v3 = vld [vmem:[%s3189_s23 + $0x3e0] ss:$16 sps:$4 sm:$0xff]  }
  0x32   : > { %1845 = vmatpush1.bf16.xpose.msra.mxu0 %v2741_v20  ;;  %v2829_v20 = vld [vmem:[%s3189_s23 + $0x68] ss:$16 sps:$4 sm:$0xff]  }
  0x33   : > { %1927 = vmatpush1.bf16.xpose.msra.mxu1 %v2742_v21  ;;  %1846 = vmatprep.subr.bf16.mxu0 %v2743_v22  ;;  %v2832_v21 = vld [vmem:[%s3189_s23 + $0x268] ss:$16 sps:$4 sm:$0xff]   ;;  %v2837_v22 = vld [vmem:[%s3189_s23 + $0x8c] ss:$16 sps:$4 sm:$0xff]  }
  0x34   : > { %1928 = vmatprep.subr.bf16.mxu1 %v2745_v23  ;;  %v2840_v23 = vld [vmem:[%s3189_s23 + $0x28c] ss:$16 sps:$4 sm:$0xff]  }
  0x3a   : > { %1847 = vmatpush1.bf16.xpose.msra.mxu0 %v2747_v24  ;;  %v2835_v24 = vld [vmem:[%s3189_s23 + $0x88] ss:$16 sps:$4 sm:$0xff]  }
  0x3b   : > { %1929 = vmatpush1.bf16.xpose.msra.mxu1 %v2748_v25  ;;  %1848 = vmatprep.subr.bf16.mxu0 %v2749_v26  ;;  %v2838_v25 = vld [vmem:[%s3189_s23 + $0x288] ss:$16 sps:$4 sm:$0xff]   ;;  %v2843_v26 = vld [vmem:[%s3189_s23 + $0xac] ss:$16 sps:$4 sm:$0xff]  }
  0x3c   : > { %1930 = vmatprep.subr.bf16.mxu1 %v2751_v27  ;;  %v2846_v27 = vld [vmem:[%s3189_s23 + $0x2ac] ss:$16 sps:$4 sm:$0xff]  }
  0x42   : > { %1849 = vmatpush1.bf16.xpose.msra.mxu0 %v2753_v28  ;;  %v2841_v28 = vld [vmem:[%s3189_s23 + $0xa8] ss:$16 sps:$4 sm:$0xff]  }
  0x43   : > { %1931 = vmatpush1.bf16.xpose.msra.mxu1 %v2754_v29  ;;  %1850 = vmatprep.subr.bf16.mxu0 %v2755_v30  ;;  %v2844_v29 = vld [vmem:[%s3189_s23 + $0x2a8] ss:$16 sps:$4 sm:$0xff]   ;;  %v2849_v30 = vld [vmem:[%s3189_s23 + $0xcc] ss:$16 sps:$4 sm:$0xff]  }
  0x44   : > { %1932 = vmatprep.subr.bf16.mxu1 %v2757_v31  ;;  %v2852_v31 = vld [vmem:[%s3189_s23 + $0x2cc] ss:$16 sps:$4 sm:$0xff]  }
  0x4a   : > { %1851 = vmatpush1.bf16.xpose.msra.mxu0 %v2759_v32  ;;  %v2847_v32 = vld [vmem:[%s3189_s23 + $0xc8] ss:$16 sps:$4 sm:$0xff]  }
  0x4b   : > { %1933 = vmatpush1.bf16.xpose.msra.mxu1 %v2760_v33  ;;  %1852 = vmatprep.subr.bf16.mxu0 %v2761_v34  ;;  %v2850_v33 = vld [vmem:[%s3189_s23 + $0x2c8] ss:$16 sps:$4 sm:$0xff]   ;;  %v2855_v34 = vld [vmem:[%s3189_s23 + $0xec] ss:$16 sps:$4 sm:$0xff]  }
  0x4c   : > { %1934 = vmatprep.subr.bf16.mxu1 %v2763_v35  ;;  %v2858_v35 = vld [vmem:[%s3189_s23 + $0x2ec] ss:$16 sps:$4 sm:$0xff]  }
  0x52   : > { %1853 = vmatpush1.bf16.xpose.msra.mxu0 %v2765_v36  ;;  %v2853_v36 = vld [vmem:[%s3189_s23 + $0xe8] ss:$16 sps:$4 sm:$0xff]  }
  0x53   : > { %1935 = vmatpush1.bf16.xpose.msra.mxu1 %v2766_v37  ;;  %1854 = vmatprep.subr.bf16.mxu0 %v2767_v38  ;;  %v2856_v37 = vld [vmem:[%s3189_s23 + $0x2e8] ss:$16 sps:$4 sm:$0xff]   ;;  %v2861_v38 = vld [vmem:[%s3189_s23 + $0x10c] ss:$16 sps:$4 sm:$0xff]  }
  0x54   : > { %1936 = vmatprep.subr.bf16.mxu1 %v2769_v39  ;;  %v2864_v39 = vld [vmem:[%s3189_s23 + $0x30c] ss:$16 sps:$4 sm:$0xff]  }
  0x5a   : > { %1855 = vmatpush1.bf16.xpose.msra.mxu0 %v2771_v40  ;;  %v2859_v40 = vld [vmem:[%s3189_s23 + $0x108] ss:$16 sps:$4 sm:$0xff]  }
  0x5b   : > { %1937 = vmatpush1.bf16.xpose.msra.mxu1 %v2772_v41  ;;  %1856 = vmatprep.subr.bf16.mxu0 %v2773_v42  ;;  %v2862_v41 = vld [vmem:[%s3189_s23 + $0x308] ss:$16 sps:$4 sm:$0xff]   ;;  %v2867_v42 = vld [vmem:[%s3189_s23 + $0x12c] ss:$16 sps:$4 sm:$0xff]  }
  0x5c   : > { %1938 = vmatprep.subr.bf16.mxu1 %v2775_v43  ;;  %v2870_v43 = vld [vmem:[%s3189_s23 + $0x32c] ss:$16 sps:$4 sm:$0xff]  }
  0x62   : > { %1857 = vmatpush1.bf16.xpose.msra.mxu0 %v2777_v44  ;;  %v2865_v44 = vld [vmem:[%s3189_s23 + $0x128] ss:$16 sps:$4 sm:$0xff]  }
  0x63   : > { %1939 = vmatpush1.bf16.xpose.msra.mxu1 %v2778_v45  ;;  %1858 = vmatprep.subr.bf16.mxu0 %v2779_v46  ;;  %v2868_v45 = vld [vmem:[%s3189_s23 + $0x328] ss:$16 sps:$4 sm:$0xff]   ;;  %v2873_v46 = vld [vmem:[%s3189_s23 + $0x14c] ss:$16 sps:$4 sm:$0xff]  }
  0x64   : > { %1940 = vmatprep.subr.bf16.mxu1 %v2781_v47  ;;  %v2876_v47 = vld [vmem:[%s3189_s23 + $0x34c] ss:$16 sps:$4 sm:$0xff]  }
  0x6a   : > { %1859 = vmatpush1.bf16.xpose.msra.mxu0 %v2783_v48  ;;  %v2871_v48 = vld [vmem:[%s3189_s23 + $0x148] ss:$16 sps:$4 sm:$0xff]  }
  0x6b   : > { %1941 = vmatpush1.bf16.xpose.msra.mxu1 %v2784_v49  ;;  %1860 = vmatprep.subr.bf16.mxu0 %v2785_v50  ;;  %v2874_v49 = vld [vmem:[%s3189_s23 + $0x348] ss:$16 sps:$4 sm:$0xff]   ;;  %v2879_v50 = vld [vmem:[%s3189_s23 + $0x16c] ss:$16 sps:$4 sm:$0xff]  }
  0x6c   : > { %1942 = vmatprep.subr.bf16.mxu1 %v2787_v51  ;;  %v2882_v51 = vld [vmem:[%s3189_s23 + $0x36c] ss:$16 sps:$4 sm:$0xff]  }
  0x72   : > { %1861 = vmatpush1.bf16.xpose.msra.mxu0 %v2789_v52  ;;  %v2877_v52 = vld [vmem:[%s3189_s23 + $0x168] ss:$16 sps:$4 sm:$0xff]  }
  0x73   : > { %1943 = vmatpush1.bf16.xpose.msra.mxu1 %v2790_v53  ;;  %1862 = vmatprep.subr.bf16.mxu0 %v2791_v54  ;;  %v2880_v53 = vld [vmem:[%s3189_s23 + $0x368] ss:$16 sps:$4 sm:$0xff]   ;;  %v2885_v54 = vld [vmem:[%s3189_s23 + $0x18c] ss:$16 sps:$4 sm:$0xff]  }
  0x74   : > { %1944 = vmatprep.subr.bf16.mxu1 %v2793_v55  ;;  %v2888_v55 = vld [vmem:[%s3189_s23 + $0x38c] ss:$16 sps:$4 sm:$0xff]  }
  0x7a   : > { %1863 = vmatpush1.bf16.xpose.msra.mxu0 %v2795_v56  ;;  %v2883_v56 = vld [vmem:[%s3189_s23 + $0x188] ss:$16 sps:$4 sm:$0xff]  }
  0x7b   : > { %1945 = vmatpush1.bf16.xpose.msra.mxu1 %v2796_v57  ;;  %1864 = vmatprep.subr.bf16.mxu0 %v2797_v58  ;;  %v2886_v57 = vld [vmem:[%s3189_s23 + $0x388] ss:$16 sps:$4 sm:$0xff]   ;;  %v2891_v58 = vld [vmem:[%s3189_s23 + $0x1ac] ss:$16 sps:$4 sm:$0xff]  }
  0x7c   : > { %1946 = vmatprep.subr.bf16.mxu1 %v2799_v59  ;;  %v2894_v59 = vld [vmem:[%s3189_s23 + $0x3ac] ss:$16 sps:$4 sm:$0xff]  }
  0x82   : > { %1865 = vmatpush1.bf16.xpose.msra.mxu0 %v2801_v60  ;;  %v2889_v60 = vld [vmem:[%s3189_s23 + $0x1a8] ss:$16 sps:$4 sm:$0xff]  }
  0x83   : > { %1947 = vmatpush1.bf16.xpose.msra.mxu1 %v2802_v61  ;;  %1866 = vmatprep.subr.bf16.mxu0 %v2803_v62  ;;  %v2892_v61 = vld [vmem:[%s3189_s23 + $0x3a8] ss:$16 sps:$4 sm:$0xff]   ;;  %v2897_v62 = vld [vmem:[%s3189_s23 + $0x1cc] ss:$16 sps:$4 sm:$0xff]  }
  0x84   : > { %1948 = vmatprep.subr.bf16.mxu1 %v2805_v63  ;;  %v2900_v63 = vld [vmem:[%s3189_s23 + $0x3cc] ss:$16 sps:$4 sm:$0xff]  }
  0x8a   : > { %1867 = vmatpush1.bf16.xpose.msra.mxu0 %v2807_v2  ;;  %v2895_v2 = vld [vmem:[%s3189_s23 + $0x1c8] ss:$16 sps:$4 sm:$0xff]  }
  0x8b   : > { %1949 = vmatpush1.bf16.xpose.msra.mxu1 %v2808_v3  ;;  %1877 = vmatprep.subr.bf16.mxu0 %v2812_v4  ;;  %v2898_v3 = vld [vmem:[%s3189_s23 + $0x3c8] ss:$16 sps:$4 sm:$0xff]   ;;  %v2903_v4 = vld [vmem:[%s3189_s23 + $0x1ec] ss:$16 sps:$4 sm:$0xff]  }
  0x8c   : > { %1959 = vmatprep.subr.bf16.mxu1 %v2815_v5  ;;  %v2906_v5 = vld [vmem:[%s3189_s23 + $0x3ec] ss:$16 sps:$4 sm:$0xff]  }
  0x91   : > { %1869 = vmatmul.mubr.bf16.vlgmr.msra.gmra.mrb[0].mxu0 %v3266_v7 }
  0x92   : > { %1951 = vmatmul.mubr.bf16.vlgmr.msra.gmra.mrb[0].mxu1 %v3266_v7  ;;  %1878 = vmatpush1.bf16.xpose.msra.mxu0 %v2810_v8  ;;  %v2901_v8 = vld [vmem:[%s3189_s23 + $0x1e8] ss:$16 sps:$4 sm:$0xff]  }
  0x93   : > { %1960 = vmatpush1.bf16.xpose.msra.mxu1 %v2813_v9  ;;  %1879 = vmatprep.subr.bf16.mxu0 %v2819_v10  ;;  %v2904_v9 = vld [vmem:[%s3189_s23 + $0x3e8] ss:$16 sps:$4 sm:$0xff]   ;;  %v2911_v10 = vld [vmem:[%s3189_s23 + $0x404] ss:$16 sps:$4 sm:$0xff]  }
  0x94   : > { %1961 = vmatprep.subr.bf16.mxu1 %v2822_v11  ;;  %1909 = vmatprep.mubr.bf16.mxu0 %v3274_v12  ;;  %v2914_v11 = vld [vmem:[%s3189_s23 + $0x604] ss:$16 sps:$4 sm:$0xff]  }
  0x95   : > { %1991 = vmatprep.mubr.bf16.mxu1 %v3274_v12 }
  0x9a   : > { %1880 = vmatpush1.bf16.xpose.msra.mxu0 %v2817_v0  ;;  %v3342_v0 = vcombine.low %v3262_v6, %v3262_v6  ;;  %v2915_v6 = vld [vmem:[%s3189_s23 + $0x420] ss:$16 sps:$4 sm:$0xff]  }
  0x9b   : > { %1962 = vmatpush1.bf16.xpose.msra.mxu1 %v2820_v13  ;;  %1881 = vmatprep.subr.bf16.mxu0 %v2825_v14  ;;  %v2909_v13 = vld [vmem:[%s3189_s23 + $0x400] ss:$16 sps:$4 sm:$0xff]  }
  0x9c   : > { %1963 = vmatprep.subr.bf16.mxu1 %v2828_v15  ;;  %v2912_v14 = vld [vmem:[%s3189_s23 + $0x600] ss:$16 sps:$4 sm:$0xff]   ;;  %v2917_v15 = vld [vmem:[%s3189_s23 + $0x424] ss:$16 sps:$4 sm:$0xff]  }
  0xa2   : > { %1882 = vmatpush1.bf16.xpose.msra.mxu0 %v2823_v16  ;;  %v2920_v16 = vld [vmem:[%s3189_s23 + $0x624] ss:$16 sps:$4 sm:$0xff]  }
  0xa3   : > { %1964 = vmatpush1.bf16.xpose.msra.mxu1 %v2826_v17  ;;  %1883 = vmatprep.subr.bf16.mxu0 %v2831_v18  ;;  %v2918_v17 = vld [vmem:[%s3189_s23 + $0x620] ss:$16 sps:$4 sm:$0xff]   ;;  %v2923_v18 = vld [vmem:[%s3189_s23 + $0x444] ss:$16 sps:$4 sm:$0xff]  }
  0xa4   : > { %1965 = vmatprep.subr.bf16.mxu1 %v2834_v19  ;;  %v2926_v19 = vld [vmem:[%s3189_s23 + $0x644] ss:$16 sps:$4 sm:$0xff]  }
  0xaa   : > { %1884 = vmatpush1.bf16.xpose.msra.mxu0 %v2829_v20  ;;  %v2921_v20 = vld [vmem:[%s3189_s23 + $0x440] ss:$16 sps:$4 sm:$0xff]  }
  0xab   : > { %1966 = vmatpush1.bf16.xpose.msra.mxu1 %v2832_v21  ;;  %1885 = vmatprep.subr.bf16.mxu0 %v2837_v22  ;;  %v2924_v21 = vld [vmem:[%s3189_s23 + $0x640] ss:$16 sps:$4 sm:$0xff]   ;;  %v2929_v22 = vld [vmem:[%s3189_s23 + $0x464] ss:$16 sps:$4 sm:$0xff]  }
  0xac   : > { %1967 = vmatprep.subr.bf16.mxu1 %v2840_v23  ;;  %v2932_v23 = vld [vmem:[%s3189_s23 + $0x664] ss:$16 sps:$4 sm:$0xff]  }
  0xb2   : > { %1886 = vmatpush1.bf16.xpose.msra.mxu0 %v2835_v24  ;;  %v2930_v24 = vld [vmem:[%s3189_s23 + $0x660] ss:$16 sps:$4 sm:$0xff]  }
  0xb3   : > { %1968 = vmatpush1.bf16.xpose.msra.mxu1 %v2838_v25  ;;  %1887 = vmatprep.subr.bf16.mxu0 %v2843_v26  ;;  %v2935_v25 = vld [vmem:[%s3189_s23 + $0x484] ss:$16 sps:$4 sm:$0xff]  }
  0xb4   : > { %1969 = vmatprep.subr.bf16.mxu1 %v2846_v27  ;;  %v2938_v26 = vld [vmem:[%s3189_s23 + $0x684] ss:$16 sps:$4 sm:$0xff]   ;;  %v2933_v27 = vld [vmem:[%s3189_s23 + $0x480] ss:$16 sps:$4 sm:$0xff]  }
  0xba   : > { %1888 = vmatpush1.bf16.xpose.msra.mxu0 %v2841_v28  ;;  %v2936_v28 = vld [vmem:[%s3189_s23 + $0x680] ss:$16 sps:$4 sm:$0xff]  }
  0xbb   : > { %1970 = vmatpush1.bf16.xpose.msra.mxu1 %v2844_v29  ;;  %1889 = vmatprep.subr.bf16.mxu0 %v2849_v30  ;;  %v2941_v29 = vld [vmem:[%s3189_s23 + $0x4a4] ss:$16 sps:$4 sm:$0xff]  }
  0xbc   : > { %1971 = vmatprep.subr.bf16.mxu1 %v2852_v31  ;;  %v2944_v30 = vld [vmem:[%s3189_s23 + $0x6a4] ss:$16 sps:$4 sm:$0xff]   ;;  %v2939_v31 = vld [vmem:[%s3189_s23 + $0x4a0] ss:$16 sps:$4 sm:$0xff]  }
  0xc2   : > { %1890 = vmatpush1.bf16.xpose.msra.mxu0 %v2847_v32  ;;  %v2942_v32 = vld [vmem:[%s3189_s23 + $0x6a0] ss:$16 sps:$4 sm:$0xff]  }
  0xc3   : > { %1972 = vmatpush1.bf16.xpose.msra.mxu1 %v2850_v33  ;;  %1891 = vmatprep.subr.bf16.mxu0 %v2855_v34  ;;  %v2947_v33 = vld [vmem:[%s3189_s23 + $0x4c4] ss:$16 sps:$4 sm:$0xff]  }
  0xc4   : > { %1973 = vmatprep.subr.bf16.mxu1 %v2858_v35  ;;  %v2950_v34 = vld [vmem:[%s3189_s23 + $0x6c4] ss:$16 sps:$4 sm:$0xff]   ;;  %v2945_v35 = vld [vmem:[%s3189_s23 + $0x4c0] ss:$16 sps:$4 sm:$0xff]  }
  0xca   : > { %1892 = vmatpush1.bf16.xpose.msra.mxu0 %v2853_v36  ;;  %v2948_v36 = vld [vmem:[%s3189_s23 + $0x6c0] ss:$16 sps:$4 sm:$0xff]  }
  0xcb   : > { %1974 = vmatpush1.bf16.xpose.msra.mxu1 %v2856_v37  ;;  %1893 = vmatprep.subr.bf16.mxu0 %v2861_v38  ;;  %v2953_v37 = vld [vmem:[%s3189_s23 + $0x4e4] ss:$16 sps:$4 sm:$0xff]  }
  0xcc   : > { %1975 = vmatprep.subr.bf16.mxu1 %v2864_v39  ;;  %v2956_v38 = vld [vmem:[%s3189_s23 + $0x6e4] ss:$16 sps:$4 sm:$0xff]   ;;  %v2951_v39 = vld [vmem:[%s3189_s23 + $0x4e0] ss:$16 sps:$4 sm:$0xff]  }
  0xd2   : > { %1894 = vmatpush1.bf16.xpose.msra.mxu0 %v2859_v40  ;;  %v2954_v40 = vld [vmem:[%s3189_s23 + $0x6e0] ss:$16 sps:$4 sm:$0xff]  }
  0xd3   : > { %1976 = vmatpush1.bf16.xpose.msra.mxu1 %v2862_v41  ;;  %1895 = vmatprep.subr.bf16.mxu0 %v2867_v42  ;;  %v2959_v41 = vld [vmem:[%s3189_s23 + $0x504] ss:$16 sps:$4 sm:$0xff]  }
  0xd4   : > { %1977 = vmatprep.subr.bf16.mxu1 %v2870_v43  ;;  %v2962_v42 = vld [vmem:[%s3189_s23 + $0x704] ss:$16 sps:$4 sm:$0xff]   ;;  %v2957_v43 = vld [vmem:[%s3189_s23 + $0x500] ss:$16 sps:$4 sm:$0xff]  }
  0xda   : > { %1896 = vmatpush1.bf16.xpose.msra.mxu0 %v2865_v44  ;;  %v2960_v44 = vld [vmem:[%s3189_s23 + $0x700] ss:$16 sps:$4 sm:$0xff]  }
  0xdb   : > { %1978 = vmatpush1.bf16.xpose.msra.mxu1 %v2868_v45  ;;  %1897 = vmatprep.subr.bf16.mxu0 %v2873_v46  ;;  %v2965_v45 = vld [vmem:[%s3189_s23 + $0x524] ss:$16 sps:$4 sm:$0xff]  }
  0xdc   : > { %1979 = vmatprep.subr.bf16.mxu1 %v2876_v47  ;;  %v2968_v46 = vld [vmem:[%s3189_s23 + $0x724] ss:$16 sps:$4 sm:$0xff]   ;;  %v2963_v47 = vld [vmem:[%s3189_s23 + $0x520] ss:$16 sps:$4 sm:$0xff]  }
  0xe2   : > { %1898 = vmatpush1.bf16.xpose.msra.mxu0 %v2871_v48  ;;  %v2966_v48 = vld [vmem:[%s3189_s23 + $0x720] ss:$16 sps:$4 sm:$0xff]  }
  0xe3   : > { %1980 = vmatpush1.bf16.xpose.msra.mxu1 %v2874_v49  ;;  %1899 = vmatprep.subr.bf16.mxu0 %v2879_v50  ;;  %v2971_v49 = vld [vmem:[%s3189_s23 + $0x544] ss:$16 sps:$4 sm:$0xff]  }
  0xe4   : > { %1981 = vmatprep.subr.bf16.mxu1 %v2882_v51  ;;  %v2974_v50 = vld [vmem:[%s3189_s23 + $0x744] ss:$16 sps:$4 sm:$0xff]   ;;  %v2969_v51 = vld [vmem:[%s3189_s23 + $0x540] ss:$16 sps:$4 sm:$0xff]  }
  0xea   : > { %1900 = vmatpush1.bf16.xpose.msra.mxu0 %v2877_v52  ;;  %v2972_v52 = vld [vmem:[%s3189_s23 + $0x740] ss:$16 sps:$4 sm:$0xff]  }
  0xeb   : > { %1982 = vmatpush1.bf16.xpose.msra.mxu1 %v2880_v53  ;;  %1901 = vmatprep.subr.bf16.mxu0 %v2885_v54  ;;  %v2977_v53 = vld [vmem:[%s3189_s23 + $0x564] ss:$16 sps:$4 sm:$0xff]  }
  0xec   : > { %1983 = vmatprep.subr.bf16.mxu1 %v2888_v55  ;;  %v2980_v54 = vld [vmem:[%s3189_s23 + $0x764] ss:$16 sps:$4 sm:$0xff]   ;;  %v2975_v55 = vld [vmem:[%s3189_s23 + $0x560] ss:$16 sps:$4 sm:$0xff]  }
  0xf2   : > { %1902 = vmatpush1.bf16.xpose.msra.mxu0 %v2883_v56  ;;  %v2978_v56 = vld [vmem:[%s3189_s23 + $0x760] ss:$16 sps:$4 sm:$0xff]  }
  0xf3   : > { %1984 = vmatpush1.bf16.xpose.msra.mxu1 %v2886_v57  ;;  %1903 = vmatprep.subr.bf16.mxu0 %v2891_v58  ;;  %v2983_v57 = vld [vmem:[%s3189_s23 + $0x584] ss:$16 sps:$4 sm:$0xff]  }
  0xf4   : > { %1985 = vmatprep.subr.bf16.mxu1 %v2894_v59  ;;  %v2986_v58 = vld [vmem:[%s3189_s23 + $0x784] ss:$16 sps:$4 sm:$0xff]   ;;  %v2981_v59 = vld [vmem:[%s3189_s23 + $0x580] ss:$16 sps:$4 sm:$0xff]  }
  0xfa   : > { %1904 = vmatpush1.bf16.xpose.msra.mxu0 %v2889_v60  ;;  %v2984_v60 = vld [vmem:[%s3189_s23 + $0x780] ss:$16 sps:$4 sm:$0xff]  }
  0xfb   : > { %1986 = vmatpush1.bf16.xpose.msra.mxu1 %v2892_v61  ;;  %1905 = vmatprep.subr.bf16.mxu0 %v2897_v62  ;;  %v2989_v61 = vld [vmem:[%s3189_s23 + $0x5a4] ss:$16 sps:$4 sm:$0xff]  }
  0xfc   : > { %1987 = vmatprep.subr.bf16.mxu1 %v2900_v63  ;;  %v2992_v62 = vld [vmem:[%s3189_s23 + $0x7a4] ss:$16 sps:$4 sm:$0xff]   ;;  %v2987_v63 = vld [vmem:[%s3189_s23 + $0x5a0] ss:$16 sps:$4 sm:$0xff]  }
 0x102   : > { %1906 = vmatpush1.bf16.xpose.msra.mxu0 %v2895_v2  ;;  %v2990_v2 = vld [vmem:[%s3189_s23 + $0x7a0] ss:$16 sps:$4 sm:$0xff]  }
 0x103   : > { %1988 = vmatpush1.bf16.xpose.msra.mxu1 %v2898_v3  ;;  %1907 = vmatprep.subr.bf16.mxu0 %v2903_v4  ;;  %v2995_v3 = vld [vmem:[%s3189_s23 + $0x5c4] ss:$16 sps:$4 sm:$0xff]  }
 0x104   : > { %1989 = vmatprep.subr.bf16.mxu1 %v2906_v5  ;;  %v2998_v4 = vld [vmem:[%s3189_s23 + $0x7c4] ss:$16 sps:$4 sm:$0xff]   ;;  %v2993_v5 = vld [vmem:[%s3189_s23 + $0x5c0] ss:$16 sps:$4 sm:$0xff]  }
 0x10a   : > { %1908 = vmatpush1.bf16.xpose.msra.mxu0 %v2901_v8  ;;  %v2996_v8 = vld [vmem:[%s3189_s23 + $0x7c0] ss:$16 sps:$4 sm:$0xff]  }
 0x10b   : > { %1990 = vmatpush1.bf16.xpose.msra.mxu1 %v2904_v9  ;;  %2000 = vmatprep.subr.bf16.mxu0 %v2911_v10  ;;  %v3001_v9 = vld [vmem:[%s3189_s23 + $0x5e4] ss:$16 sps:$4 sm:$0xff]  }
 0x10c   : > { %2082 = vmatprep.subr.bf16.mxu1 %v2914_v11  ;;  %v3004_v10 = vld [vmem:[%s3189_s23 + $0x7e4] ss:$16 sps:$4 sm:$0xff]   ;;  %v2999_v11 = vld [vmem:[%s3189_s23 + $0x5e0] ss:$16 sps:$4 sm:$0xff]  }
 0x111   : > { %1910 = vmatmul.mubr.bf16.vlgmr.msra.gmra.mrb[0].mxu0 %v3342_v0 }
 0x112   : > { %1992 = vmatmul.mubr.bf16.vlgmr.msra.gmra.mrb[0].mxu1 %v3342_v0  ;;  %2001 = vmatpush1.bf16.xpose.msra.mxu0 %v2909_v13  ;;  %v3002_v13 = vld [vmem:[%s3189_s23 + $0x7e0] ss:$16 sps:$4 sm:$0xff]  }
 0x113   : > { %2083 = vmatpush1.bf16.xpose.msra.mxu1 %v2912_v14  ;;  %2002 = vmatprep.subr.bf16.mxu0 %v2917_v15  ;;  %v3007_v14 = vld [vmem:[%s3189_s23 + $0x40c] ss:$16 sps:$4 sm:$0xff]  }
 0x114   : > { %2084 = vmatprep.subr.bf16.mxu1 %v2920_v16  ;;  %2032 = vmatprep.mubr.bf16.mxu0 %v3184_v1  ;;  %v3010_v15 = vld [vmem:[%s3189_s23 + $0x60c] ss:$16 sps:$4 sm:$0xff]   ;;  %v3005_v16 = vld [vmem:[%s3189_s23 + $0x408] ss:$16 sps:$4 sm:$0xff]  }
 0x115   : > { %2114 = vmatprep.mubr.bf16.mxu1 %v3184_v1  ;;  %v2927_v1 = vld [vmem:[%s3189_s23 + $0x460] ss:$16 sps:$4 sm:$0xff]  }
 0x11a   : > { %2003 = vmatpush1.bf16.xpose.msra.mxu0 %v2915_v6  ;;  %v3008_v6 = vld [vmem:[%s3189_s23 + $0x608] ss:$16 sps:$4 sm:$0xff]  }
 0x11b   : > { %2085 = vmatpush1.bf16.xpose.msra.mxu1 %v2918_v17  ;;  %2004 = vmatprep.subr.bf16.mxu0 %v2923_v18  ;;  %v3013_v17 = vld [vmem:[%s3189_s23 + $0x42c] ss:$16 sps:$4 sm:$0xff]  }
 0x11c   : > { %2086 = vmatprep.subr.bf16.mxu1 %v2926_v19  ;;  %v3016_v18 = vld [vmem:[%s3189_s23 + $0x62c] ss:$16 sps:$4 sm:$0xff]   ;;  %v3011_v19 = vld [vmem:[%s3189_s23 + $0x428] ss:$16 sps:$4 sm:$0xff]  }
 0x122   : > { %2005 = vmatpush1.bf16.xpose.msra.mxu0 %v2921_v20  ;;  %v3014_v20 = vld [vmem:[%s3189_s23 + $0x628] ss:$16 sps:$4 sm:$0xff]  }
 0x123   : > { %2087 = vmatpush1.bf16.xpose.msra.mxu1 %v2924_v21  ;;  %2006 = vmatprep.subr.bf16.mxu0 %v2929_v22  ;;  %v3019_v21 = vld [vmem:[%s3189_s23 + $0x44c] ss:$16 sps:$4 sm:$0xff]  }
 0x124   : > { %2088 = vmatprep.subr.bf16.mxu1 %v2932_v23  ;;  %v3022_v22 = vld [vmem:[%s3189_s23 + $0x64c] ss:$16 sps:$4 sm:$0xff]   ;;  %v3020_v23 = vld [vmem:[%s3189_s23 + $0x648] ss:$16 sps:$4 sm:$0xff]  }
 0x12a   : > { %2007 = vmatpush1.bf16.xpose.msra.mxu0 %v2927_v1  ;;  %v3025_v1 = vld [vmem:[%s3189_s23 + $0x46c] ss:$16 sps:$4 sm:$0xff]  }
 0x12b   : > { %2089 = vmatpush1.bf16.xpose.msra.mxu1 %v2930_v24  ;;  %2008 = vmatprep.subr.bf16.mxu0 %v2935_v25  ;;  %v3028_v24 = vld [vmem:[%s3189_s23 + $0x66c] ss:$16 sps:$4 sm:$0xff]   ;;  %v3026_v25 = vld [vmem:[%s3189_s23 + $0x668] ss:$16 sps:$4 sm:$0xff]  }
 0x12c   : > { %2090 = vmatprep.subr.bf16.mxu1 %v2938_v26  ;;  %v3031_v26 = vld [vmem:[%s3189_s23 + $0x48c] ss:$16 sps:$4 sm:$0xff]  }
 0x132   : > { %2009 = vmatpush1.bf16.xpose.msra.mxu0 %v2933_v27  ;;  %v3034_v27 = vld [vmem:[%s3189_s23 + $0x68c] ss:$16 sps:$4 sm:$0xff]  }
 0x133   : > { %2091 = vmatpush1.bf16.xpose.msra.mxu1 %v2936_v28  ;;  %2010 = vmatprep.subr.bf16.mxu0 %v2941_v29  ;;  %v3029_v28 = vld [vmem:[%s3189_s23 + $0x488] ss:$16 sps:$4 sm:$0xff]  }
 0x134   : > { %2092 = vmatprep.subr.bf16.mxu1 %v2944_v30  ;;  %v3032_v29 = vld [vmem:[%s3189_s23 + $0x688] ss:$16 sps:$4 sm:$0xff]   ;;  %v3037_v30 = vld [vmem:[%s3189_s23 + $0x4ac] ss:$16 sps:$4 sm:$0xff]  }
 0x13a   : > { %2011 = vmatpush1.bf16.xpose.msra.mxu0 %v2939_v31  ;;  %v3040_v31 = vld [vmem:[%s3189_s23 + $0x6ac] ss:$16 sps:$4 sm:$0xff]  }
 0x13b   : > { %2093 = vmatpush1.bf16.xpose.msra.mxu1 %v2942_v32  ;;  %2012 = vmatprep.subr.bf16.mxu0 %v2947_v33  ;;  %v3035_v32 = vld [vmem:[%s3189_s23 + $0x4a8] ss:$16 sps:$4 sm:$0xff]  }
 0x13c   : > { %2094 = vmatprep.subr.bf16.mxu1 %v2950_v34  ;;  %v3038_v33 = vld [vmem:[%s3189_s23 + $0x6a8] ss:$16 sps:$4 sm:$0xff]   ;;  %v3043_v34 = vld [vmem:[%s3189_s23 + $0x4cc] ss:$16 sps:$4 sm:$0xff]  }
 0x142   : > { %2013 = vmatpush1.bf16.xpose.msra.mxu0 %v2945_v35  ;;  %v3046_v35 = vld [vmem:[%s3189_s23 + $0x6cc] ss:$16 sps:$4 sm:$0xff]  }
 0x143   : > { %2095 = vmatpush1.bf16.xpose.msra.mxu1 %v2948_v36  ;;  %2014 = vmatprep.subr.bf16.mxu0 %v2953_v37  ;;  %v3041_v36 = vld [vmem:[%s3189_s23 + $0x4c8] ss:$16 sps:$4 sm:$0xff]  }
 0x144   : > { %2096 = vmatprep.subr.bf16.mxu1 %v2956_v38  ;;  %v3044_v37 = vld [vmem:[%s3189_s23 + $0x6c8] ss:$16 sps:$4 sm:$0xff]   ;;  %v3049_v38 = vld [vmem:[%s3189_s23 + $0x4ec] ss:$16 sps:$4 sm:$0xff]  }
 0x14a   : > { %2015 = vmatpush1.bf16.xpose.msra.mxu0 %v2951_v39  ;;  %v3052_v39 = vld [vmem:[%s3189_s23 + $0x6ec] ss:$16 sps:$4 sm:$0xff]  }
 0x14b   : > { %2097 = vmatpush1.bf16.xpose.msra.mxu1 %v2954_v40  ;;  %2016 = vmatprep.subr.bf16.mxu0 %v2959_v41  ;;  %v3047_v40 = vld [vmem:[%s3189_s23 + $0x4e8] ss:$16 sps:$4 sm:$0xff]  }
 0x14c   : > { %2098 = vmatprep.subr.bf16.mxu1 %v2962_v42  ;;  %v3050_v41 = vld [vmem:[%s3189_s23 + $0x6e8] ss:$16 sps:$4 sm:$0xff]   ;;  %v3055_v42 = vld [vmem:[%s3189_s23 + $0x50c] ss:$16 sps:$4 sm:$0xff]  }
 0x152   : > { %2017 = vmatpush1.bf16.xpose.msra.mxu0 %v2957_v43  ;;  %v3058_v43 = vld [vmem:[%s3189_s23 + $0x70c] ss:$16 sps:$4 sm:$0xff]  }
 0x153   : > { %2099 = vmatpush1.bf16.xpose.msra.mxu1 %v2960_v44  ;;  %2018 = vmatprep.subr.bf16.mxu0 %v2965_v45  ;;  %v3053_v44 = vld [vmem:[%s3189_s23 + $0x508] ss:$16 sps:$4 sm:$0xff]  }
 0x154   : > { %2100 = vmatprep.subr.bf16.mxu1 %v2968_v46  ;;  %v3056_v45 = vld [vmem:[%s3189_s23 + $0x708] ss:$16 sps:$4 sm:$0xff]   ;;  %v3061_v46 = vld [vmem:[%s3189_s23 + $0x52c] ss:$16 sps:$4 sm:$0xff]  }
 0x15a   : > { %2019 = vmatpush1.bf16.xpose.msra.mxu0 %v2963_v47  ;;  %v3064_v47 = vld [vmem:[%s3189_s23 + $0x72c] ss:$16 sps:$4 sm:$0xff]  }
 0x15b   : > { %2101 = vmatpush1.bf16.xpose.msra.mxu1 %v2966_v48  ;;  %2020 = vmatprep.subr.bf16.mxu0 %v2971_v49  ;;  %v502_v48 = vlaneseq  ;;  %v3059_v49 = vld [vmem:[%s3189_s23 + $0x528] ss:$16 sps:$4 sm:$0xff]  }
 0x15c   : > { %2102 = vmatprep.subr.bf16.mxu1 %v2974_v50  ;;  %v3062_v50 = vld [vmem:[%s3189_s23 + $0x728] ss:$16 sps:$4 sm:$0xff]  }
 0x162   : > { %2021 = vmatpush1.bf16.xpose.msra.mxu0 %v2969_v51  ;;  %v3067_v51 = vld [vmem:[%s3189_s23 + $0x54c] ss:$16 sps:$4 sm:$0xff]  }
 0x163   : > { %2103 = vmatpush1.bf16.xpose.msra.mxu1 %v2972_v52  ;;  %2022 = vmatprep.subr.bf16.mxu0 %v2977_v53  ;;  %v3070_v52 = vld [vmem:[%s3189_s23 + $0x74c] ss:$16 sps:$4 sm:$0xff]   ;;  %v3459_v53 = vshrl.u32 %v502_v48, 7 }
 0x164   : > { %2104 = vmatprep.subr.bf16.mxu1 %v2980_v54 }
 0x165   : > { %v504_v54 = vsub.s32 0, %v3459_v53 }
 0x16a   : > { %2023 = vmatpush1.bf16.xpose.msra.mxu0 %v2975_v55  ;;  %v512_v55 = vsub.s32 2, %v3459_v53 }
 0x16b   : > { %2105 = vmatpush1.bf16.xpose.msra.mxu1 %v2978_v56  ;;  %2024 = vmatprep.subr.bf16.mxu0 %v2983_v57  ;;  %v3065_v56 = vld [vmem:[%s3189_s23 + $0x548] ss:$16 sps:$4 sm:$0xff]  }
 0x16c   : > { %2106 = vmatprep.subr.bf16.mxu1 %v2986_v58  ;;  %v3068_v57 = vld [vmem:[%s3189_s23 + $0x748] ss:$16 sps:$4 sm:$0xff]   ;;  %v3469_v58 = vld [vmem:[%s230_s29] sm:$0xff] }
 0x172   : > { %2025 = vmatpush1.bf16.xpose.msra.mxu0 %v2981_v59  ;;  %v508_v59 = vsub.s32 1, %v3459_v53 }
 0x173   : > { %2107 = vmatpush1.bf16.xpose.msra.mxu1 %v2984_v60  ;;  %2026 = vmatprep.subr.bf16.mxu0 %v2989_v61  ;;  %v516_v60 = vsub.s32 3, %v3459_v53  ;;  %v3073_v61 = vld [vmem:[%s3189_s23 + $0x56c] ss:$16 sps:$4 sm:$0xff]  }
 0x174   : > { %2108 = vmatprep.subr.bf16.mxu1 %v2992_v62  ;;  %v3076_v62 = vld [vmem:[%s3189_s23 + $0x76c] ss:$16 sps:$4 sm:$0xff]  }
 0x17a   : > { %2027 = vmatpush1.bf16.xpose.msra.mxu0 %v2987_v63  ;;  %v505_v63 = vrot.slane %v3469_v58, %v504_v54  ;;  %v3089_v54 = vld [vmem:[%s3189_s23 + $0x5c8] ss:$16 sps:$4 sm:$0xff]  }
 0x17b   : > { %2109 = vmatpush1.bf16.xpose.msra.mxu1 %v2990_v2  ;;  %2028 = vmatprep.subr.bf16.mxu0 %v2995_v3  ;;  %v513_v2 = vrot.slane %v3469_v58, %v512_v55  ;;  %v509_v3 = vrot.slane %v3469_v58, %v508_v59  ;;  %v3092_v55 = vld [vmem:[%s3189_s23 + $0x7c8] ss:$16 sps:$4 sm:$0xff]   ;;  %v3097_v59 = vld [vmem:[%s3189_s23 + $0x5ec] ss:$16 sps:$4 sm:$0xff]  }
 0x17c   : > { %2110 = vmatprep.subr.bf16.mxu1 %v2998_v4  ;;  %v517_v4 = vrot.slane %v3469_v58, %v516_v60  ;;  %v3100_v60 = vld [vmem:[%s3189_s23 + $0x7ec] ss:$16 sps:$4 sm:$0xff]  }
 0x182   : > { %2029 = vmatpush1.bf16.xpose.msra.mxu0 %v2993_v5 }
 0x183   : > { %2111 = vmatpush1.bf16.xpose.msra.mxu1 %v2996_v8  ;;  %2030 = vmatprep.subr.bf16.mxu0 %v3001_v9 }
 0x184   : > { %2112 = vmatprep.subr.bf16.mxu1 %v3004_v10 }
 0x18a   : > { %2031 = vmatpush1.bf16.xpose.msra.mxu0 %v2999_v11 }
 0x18b   : > { %2113 = vmatpush1.bf16.xpose.msra.mxu1 %v3002_v13  ;;  %2041 = vmatprep.subr.bf16.mxu0 %v3007_v14  ;;  %v3071_v14 = vld [vmem:[%s3189_s23 + $0x568] ss:$16 sps:$4 sm:$0xff]  }
 0x18c   : > { %2123 = vmatprep.subr.bf16.mxu1 %v3010_v15 }
 0x191   : > { %2033 = vmatmul.mubr.bf16.vlgmr.msra.gmra.mrb[4].mxu0 %v3266_v7 }
 0x192   : > { %2115 = vmatmul.mubr.bf16.vlgmr.msra.gmra.mrb[4].mxu1 %v3266_v7  ;;  %2042 = vmatpush1.bf16.xpose.msra.mxu0 %v3005_v16  ;;  %v3017_v7 = vld [vmem:[%s3189_s23 + $0x448] ss:$16 sps:$4 sm:$0xff]  }
 0x193   : > { %2124 = vmatpush1.bf16.xpose.msra.mxu1 %v3008_v6  ;;  %2043 = vmatprep.subr.bf16.mxu0 %v3013_v17  ;;  %v3074_v17 = vld [vmem:[%s3189_s23 + $0x768] ss:$16 sps:$4 sm:$0xff]  }
 0x194   : > { %2125 = vmatprep.subr.bf16.mxu1 %v3016_v18  ;;  %2073 = vmatprep.mubr.bf16.mxu0 %v3274_v12  ;;  %v3079_v18 = vld [vmem:[%s3189_s23 + $0x58c] ss:$16 sps:$4 sm:$0xff]  }
 0x195   : > { %2155 = vmatprep.mubr.bf16.mxu1 %v3274_v12  ;;  %v3023_v12 = vld [vmem:[%s3189_s23 + $0x468] ss:$16 sps:$4 sm:$0xff]  }
 0x19a   : > { %2044 = vmatpush1.bf16.xpose.msra.mxu0 %v3011_v19 }
 0x19b   : > { %2126 = vmatpush1.bf16.xpose.msra.mxu1 %v3014_v20  ;;  %2045 = vmatprep.subr.bf16.mxu0 %v3019_v21 }
 0x19c   : > { %2127 = vmatprep.subr.bf16.mxu1 %v3022_v22 }
 0x1a2   : > { %2046 = vmatpush1.bf16.xpose.msra.mxu0 %v3017_v7  ;;  %v3082_v7 = vld [vmem:[%s3189_s23 + $0x78c] ss:$16 sps:$4 sm:$0xff]  }
 0x1a3   : > { %2128 = vmatpush1.bf16.xpose.msra.mxu1 %v3020_v23  ;;  %2047 = vmatprep.subr.bf16.mxu0 %v3025_v1 }
 0x1a4   : > { %2129 = vmatprep.subr.bf16.mxu1 %v3028_v24 }
 0x1aa   : > { %2048 = vmatpush1.bf16.xpose.msra.mxu0 %v3023_v12 }
 0x1ab   : > { %2130 = vmatpush1.bf16.xpose.msra.mxu1 %v3026_v25  ;;  %2049 = vmatprep.subr.bf16.mxu0 %v3031_v26 }
 0x1ac   : > { %2131 = vmatprep.subr.bf16.mxu1 %v3034_v27 }
 0x1b2   : > { %2050 = vmatpush1.bf16.xpose.msra.mxu0 %v3029_v28 }
 0x1b3   : > { %2132 = vmatpush1.bf16.xpose.msra.mxu1 %v3032_v29  ;;  %2051 = vmatprep.subr.bf16.mxu0 %v3037_v30 }
 0x1b4   : > { %2133 = vmatprep.subr.bf16.mxu1 %v3040_v31  ;;  %v3077_v31 = vld [vmem:[%s3189_s23 + $0x588] ss:$16 sps:$4 sm:$0xff]  }
 0x1ba   : > { %2052 = vmatpush1.bf16.xpose.msra.mxu0 %v3035_v32  ;;  %v3080_v32 = vld [vmem:[%s3189_s23 + $0x788] ss:$16 sps:$4 sm:$0xff]  }
 0x1bb   : > { %2134 = vmatpush1.bf16.xpose.msra.mxu1 %v3038_v33  ;;  %2053 = vmatprep.subr.bf16.mxu0 %v3043_v34  ;;  %v3085_v34 = vld [vmem:[%s3189_s23 + $0x5ac] ss:$16 sps:$4 sm:$0xff]  }
 0x1bc   : > { %2135 = vmatprep.subr.bf16.mxu1 %v3046_v35  ;;  %v3088_v35 = vld [vmem:[%s3189_s23 + $0x7ac] ss:$16 sps:$4 sm:$0xff]  }
 0x1c2   : > { %2054 = vmatpush1.bf16.xpose.msra.mxu0 %v3041_v36  ;;  %v3083_v36 = vld [vmem:[%s3189_s23 + $0x5a8] ss:$16 sps:$4 sm:$0xff]  }
 0x1c3   : > { %2136 = vmatpush1.bf16.xpose.msra.mxu1 %v3044_v37  ;;  %2055 = vmatprep.subr.bf16.mxu0 %v3049_v38  ;;  %v3086_v37 = vld [vmem:[%s3189_s23 + $0x7a8] ss:$16 sps:$4 sm:$0xff]  }
 0x1c4   : > { %2137 = vmatprep.subr.bf16.mxu1 %v3052_v39  ;;  %v3091_v39 = vld [vmem:[%s3189_s23 + $0x5cc] ss:$16 sps:$4 sm:$0xff]  }
 0x1ca   : > { %2056 = vmatpush1.bf16.xpose.msra.mxu0 %v3047_v40  ;;  %v3094_v40 = vld [vmem:[%s3189_s23 + $0x7cc] ss:$16 sps:$4 sm:$0xff]  }
 0x1cb   : > { %2138 = vmatpush1.bf16.xpose.msra.mxu1 %v3050_v41  ;;  %2057 = vmatprep.subr.bf16.mxu0 %v3055_v42 }
 0x1cc   : > { %2139 = vmatprep.subr.bf16.mxu1 %v3058_v43 }
 0x1d2   : > { %2058 = vmatpush1.bf16.xpose.msra.mxu0 %v3053_v44  ;;  %v2164_v44 = vld [vmem:[%s3503_s7] sm:$0xff] }
 0x1d3   : > { %2140 = vmatpush1.bf16.xpose.msra.mxu1 %v3056_v45  ;;  %2059 = vmatprep.subr.bf16.mxu0 %v3061_v46  ;;  %v2168_v48 = vunpack.c.l.bf16 %v2164_v44 }
 0x1d4   : > { %2141 = vmatprep.subr.bf16.mxu1 %v3064_v47 }
 0x1da   : > { %2060 = vmatpush1.bf16.xpose.msra.mxu0 %v3059_v49 }
 0x1db   : > { %2142 = vmatpush1.bf16.xpose.msra.mxu1 %v3062_v50  ;;  %2061 = vmatprep.subr.bf16.mxu0 %v3067_v51  ;;  %v2165_v51 = vld [vmem:[%s3503_s7 + $0x8] sm:$0xff] }
 0x1dc   : > { %2143 = vmatprep.subr.bf16.mxu1 %v3070_v52  ;;  %v2169_v52 = vunpack.c.h.bf16 %v2164_v44 }
 0x1e2   : > { %2062 = vmatpush1.bf16.xpose.msra.mxu0 %v3065_v56 }
 0x1e3   : > { %2144 = vmatpush1.bf16.xpose.msra.mxu1 %v3068_v57  ;;  %2063 = vmatprep.subr.bf16.mxu0 %v3073_v61 }
 0x1e4   : > { %2145 = vmatprep.subr.bf16.mxu1 %v3076_v62  ;;  %v1911_v5 = vpop.f32.mrb[0].mxu0 }
 0x1e5   : > { %v1993_v8 = vpop.f32.mrb[0].mxu1  ;;  %v3479_v9 = vadd.f32 %v1911_v5, %v505_v63  ;;  %v1913_v11 = vpop.f32.mrb[1].mxu0  ;;  %v2170_v63 = vunpack.c.l.bf16 %v2165_v51 }
 0x1e6   : > { %v3481_v10 = vadd.f32 %v1993_v8, %v513_v2  ;;  %v1995_v13 = vpop.f32.mrb[1].mxu1  ;;  %v3484_v15 = vadd.f32 %v1913_v11, %v509_v3  ;;  %v1915_v16 = vpop.f32.mrb[2].mxu0 }
 0x1e7   : > { %v1997_v6 = vpop.f32.mrb[2].mxu1  ;;  %v2200_v19 = vand.u32 2147483647, %v3479_v9  ;;  %v3489_v20 = vadd.f32 %v1995_v13, %v517_v4  ;;  %v1916_v21 = vpop.f32.mrb[3].mxu0  ;;  %v2176_v61 = vmax.f32 %v3479_v9, 0.0  ;;  %v2184_v62 = vmul.f32 %v3479_v9, %v2168_v48 }
 0x1e8   : > { %v1998_v22 = vpop.f32.mrb[3].mxu1  ;;  %v2202_v23 = vand.u32 2147483647, %v3481_v10  ;;  %v2201_v24 = vand.u32 2147483647, %v3484_v15  ;;  %v2177_v5 = vmax.f32 %v3484_v15, 0.0  ;;  %v2185_v8 = vmul.f32 %v3484_v15, %v2169_v52 }
 0x1e9   : > { %v2208_v1 = vsub.f32 0.0, %v2200_v19  ;;  %v2203_v27 = vand.u32 2147483647, %v3489_v20  ;;  %v2178_v11 = vmax.f32 %v3481_v10, 0.0  ;;  %v2171_v16 = vunpack.c.h.bf16 %v2165_v51  ;;  %v3095_v21 = vld [vmem:[%s3189_s23 + $0x5e8] ss:$16 sps:$4 sm:$0xff]  }
 0x1ea   : > { %v2210_v12 = vsub.f32 0.0, %v2202_v23  ;;  %2064 = vmatpush1.bf16.xpose.msra.mxu0 %v3071_v14  ;;  %v2209_v26 = vsub.f32 0.0, %v2201_v24  ;;  %v2192_v6 = vsub.f32 %v2176_v61, %v2184_v62  ;;  %v2179_v23 = vmax.f32 %v3489_v20, 0.0  ;;  %v3098_v24 = vld [vmem:[%s3189_s23 + $0x7e8] ss:$16 sps:$4 sm:$0xff]  }
 0x1eb   : > { %2146 = vmatpush1.bf16.xpose.msra.mxu1 %v3074_v17  ;;  %v2216_v25 = vmul.f32 1.442695, %v2208_v1  ;;  %2065 = vmatprep.subr.bf16.mxu0 %v3079_v18  ;;  %v2211_v30 = vsub.f32 0.0, %v2203_v27  ;;  %v2186_v17 = vmul.f32 %v3481_v10, %v2170_v63  ;;  %v524_v48 = vsub.s32 5, %v3459_v53 }
 0x1ec   : > { %2147 = vmatprep.subr.bf16.mxu1 %v3082_v7  ;;  %v2220_v28 = vmul.f32 1.442695, %v2210_v12  ;;  %v2218_v29 = vmul.f32 1.442695, %v2209_v26  ;;  %v2193_v26 = vsub.f32 %v2177_v5, %v2185_v8 }
 0x1ed   : > { %3101 = vpow2.f32 %v2216_v25  ;;  %v2222_v33 = vmul.f32 1.442695, %v2211_v30  ;;  %v525_v52 = vrot.slane %v3469_v58, %v524_v48 }
 0x1ee   : > { %3103 = vpow2.f32 %v2220_v28 }
 0x1ef   : > { %3105 = vpow2.f32 %v2218_v29 }
 0x1f0   : > { %3107 = vpow2.f32 %v2222_v33  ;;  %v2187_v33 = vmul.f32 %v3489_v20, %v2171_v16  ;;  %v520_v20 = vsub.s32 4, %v3459_v53 }
 0x1f2   : > { %2066 = vmatpush1.bf16.xpose.msra.mxu0 %v3077_v31 }
 0x1f3   : > { %2148 = vmatpush1.bf16.xpose.msra.mxu1 %v3080_v32  ;;  %2067 = vmatprep.subr.bf16.mxu0 %v3085_v34 }
 0x1f4   : > { %2149 = vmatprep.subr.bf16.mxu1 %v3088_v35 }
 0x1f7   : > { %v3102_v38 = vpop.eup %3101 }
 0x1f8   : > { %v3509_v41 = vpop.eup %3103  ;;  %v2232_v42 = vadd.f32 1.0, %v3102_v38  ;;  %v2235_v50 = vmul.f32 -0.5, %v3102_v38  ;;  %v2238_v4 = vand.u32 2147483647, %v3102_v38 }
 0x1f9   : > { %v3511_v43 = vpop.eup %3105  ;;  %v2250_v45 = vadd.f32 1.0, %v3509_v41  ;;  %v2253_v56 = vmul.f32 -0.5, %v3509_v41  ;;  %v2256_v18 = vand.u32 2147483647, %v3509_v41 }
 0x1fa   : > { %3109 = vlog2.f32 %v2232_v42  ;;  %v2241_v46 = vadd.f32 1.0, %v3511_v43  ;;  %2068 = vmatpush1.bf16.xpose.msra.mxu0 %v3083_v36  ;;  %v3516_v47 = vpop.eup %3107  ;;  %v2244_v57 = vmul.f32 -0.5, %v3511_v43  ;;  %v2236_v2 = vadd.f32 1.0, %v2235_v50 }
 0x1fb   : > { %2150 = vmatpush1.bf16.xpose.msra.mxu1 %v3086_v37  ;;  %3111 = vlog2.f32 %v2250_v45  ;;  %2069 = vmatprep.subr.bf16.mxu0 %v3091_v39  ;;  %v2259_v49 = vadd.f32 1.0, %v3516_v47  ;;  %v2262_v3 = vmul.f32 -0.5, %v3516_v47  ;;  %v2254_v13 = vadd.f32 1.0, %v2253_v56 }
 0x1fc   : > { %2151 = vmatprep.subr.bf16.mxu1 %v3094_v40  ;;  %3113 = vlog2.f32 %v2241_v46  ;;  %v2245_v14 = vadd.f32 1.0, %v2244_v57  ;;  %v2247_v19 = vand.u32 2147483647, %v3511_v43  ;;  %v2237_v7 = vmul.f32 %v3102_v38, %v2236_v2 }
 0x1fd   : > { %3115 = vlog2.f32 %v2259_v49  ;;  %v2263_v1 = vadd.f32 1.0, %v2262_v3  ;;  %vm2239_vm0 = vcmp.lt.f32.partialorder %v2238_v4, 0.0004427343  ;;  %v2265_v27 = vand.u32 2147483647, %v3516_v47 }
 0x1fe   : > { %v2255_v10 = vmul.f32 %v3509_v41, %v2254_v13  ;;  %v2246_v30 = vmul.f32 %v3511_v43, %v2245_v14  ;;  %vm2257_vm1 = vcmp.lt.f32.partialorder %v2256_v18, 0.0004427343  ;;  %vm2248_vm2 = vcmp.lt.f32.partialorder %v2247_v19, 0.0004427343 }
 0x1ff   : > { %v2264_v37 = vmul.f32 %v3516_v47, %v2263_v1  ;;  %v2194_v38 = vsub.f32 %v2178_v11, %v2186_v17  ;;  %vm2266_vm3 = vcmp.lt.f32.partialorder %v2265_v27, 0.0004427343  ;;  %v2195_v43 = vsub.f32 %v2179_v23, %v2187_v33 }
 0x200   : > { %v528_v47 = vsub.s32 6, %v3459_v53  ;;  %v532_v49 = vsub.s32 7, %v3459_v53  ;;  %v521_v50 = vrot.slane %v3469_v58, %v520_v20 }
 0x202   : > { %2070 = vmatpush1.bf16.xpose.msra.mxu0 %v3089_v54  ;;  %v529_v51 = vrot.slane %v3469_v58, %v528_v47  ;;  %v533_v54 = vrot.slane %v3469_v58, %v532_v49 }
 0x203   : > { %2152 = vmatpush1.bf16.xpose.msra.mxu1 %v3092_v55  ;;  %2071 = vmatprep.subr.bf16.mxu0 %v3097_v59 }
 0x204   : > { %2153 = vmatprep.subr.bf16.mxu1 %v3100_v60  ;;  %v3110_v9 = vpop.eup %3109 }
 0x205   : > { %v3112_v15 = vpop.eup %3111  ;;  %v2234_v22 = vmul.f32 0.6931472, %v3110_v9 }
 0x206   : > { %v3114_v12 = vpop.eup %3113  ;;  %v2252_v25 = vmul.f32 0.6931472, %v3112_v15 }
 0x207   : > { %v2240_v28 = vsel %vm2239_vm0, %v2237_v7, %v2234_v22  ;;  %v2243_v29 = vmul.f32 0.6931472, %v3114_v12  ;;  %v3116_v31 = vpop.eup %3115  ;;  %v2166_v7 = vld [vmem:[%s3503_s7 + $0x10] sm:$0xff] }
 0x208   : > { %v2304_v32 = vadd.f32 %v2240_v28, %v2192_v6  ;;  %v2258_v34 = vsel %vm2257_vm1, %v2255_v10, %v2252_v25  ;;  %v2261_v36 = vmul.f32 0.6931472, %v3116_v31  ;;  %v2172_v12 = vunpack.c.l.bf16 %v2166_v7 }
 0x209   : > { %v2249_v35 = vsel %vm2248_vm2, %v2246_v30, %v2243_v29  ;;  %v2306_v41 = vadd.f32 %v2258_v34, %v2194_v38  ;;  %v2173_v28 = vunpack.c.h.bf16 %v2166_v7 }
 0x20a   : > { %v2305_v39 = vadd.f32 %v2249_v35, %v2193_v26  ;;  %2072 = vmatpush1.bf16.xpose.msra.mxu0 %v3095_v21  ;;  %v2267_v40 = vsel %vm2266_vm3, %v2264_v37, %v2261_v36  ;;  %v2167_v26 = vld [vmem:[%s3503_s7 + $0x18] sm:$0xff] }
 0x20b   : > { %2154 = vmatpush1.bf16.xpose.msra.mxu1 %v3098_v24  ;;  %v2307_v44 = vadd.f32 %v2267_v40, %v2195_v43 }
 0x20c   : > { %v2312_v42 = vadd.f32 %v2305_v39, %v2304_v32  ;;  %v2174_v32 = vunpack.c.l.bf16 %v2167_v26  ;;  %v2175_v39 = vunpack.c.h.bf16 %v2167_v26 }
 0x20e   : > { %v2313_v45 = vadd.f32 %v2312_v42, %v2306_v41 }
 0x210   : > { %v3543_v46 = vadd.f32 %v2313_v45, %v2307_v44 }
 0x211   : > { %2074 = vmatmul.mubr.bf16.vlgmr.msra.gmra.mrb[4].mxu0 %v3342_v0 }
 0x212   : > { %2156 = vmatmul.mubr.bf16.vlgmr.msra.gmra.mrb[4].mxu1 %v3342_v0 }
 0x2e4   : > { %v2075_v55 = vpop.f32.mrb[4].mxu0 }
 0x2e5   : > { %v2157_v56 = vpop.f32.mrb[4].mxu1  ;;  %v2683_v57 = vadd.f32 %v2075_v55, %v521_v50  ;;  %v2077_v59 = vpop.f32.mrb[5].mxu0 }
 0x2e6   : > { %v3555_v0 = vadd.f32 %v2157_v56, %v529_v51  ;;  %v2159_v60 = vpop.f32.mrb[5].mxu1  ;;  %v3557_v61 = vadd.f32 %v2077_v59, %v525_v52  ;;  %v2079_v53 = vpop.f32.mrb[6].mxu0 }
 0x2e7   : > { %v3559_v62 = vadd.f32 %v2159_v60, %v533_v54  ;;  %v2161_v63 = vpop.f32.mrb[6].mxu1  ;;  %v2204_v2 = vand.u32 2147483647, %v2683_v57  ;;  %v2080_v3 = vpop.f32.mrb[7].mxu0  ;;  %v2180_v30 = vmax.f32 %v2683_v57, 0.0  ;;  %v2188_v31 = vmul.f32 %v2683_v57, %v2172_v12 }
 0x2e8   : > { %v2162_v4 = vpop.f32.mrb[7].mxu1  ;;  %v2206_v5 = vand.u32 2147483647, %v3555_v0  ;;  %v2205_v58 = vand.u32 2147483647, %v3557_v61  ;;  %v2181_v35 = vmax.f32 %v3557_v61, 0.0  ;;  %v2189_v36 = vmul.f32 %v3557_v61, %v2173_v28 }
 0x2e9   : > { %v2212_v8 = vsub.f32 0.0, %v2204_v2  ;;  %v2207_v13 = vand.u32 2147483647, %v3559_v62  ;;  %v2182_v38 = vmax.f32 %v3555_v0, 0.0  ;;  %v2196_v43 = vsub.f32 %v2180_v30, %v2188_v31 }
 0x2ea   : > { %v2214_v11 = vsub.f32 0.0, %v2206_v5  ;;  %v2213_v16 = vsub.f32 0.0, %v2205_v58  ;;  %v2190_v44 = vmul.f32 %v3555_v0, %v2174_v32  ;;  %v2183_v48 = vmax.f32 %v3559_v62, 0.0 }
 0x2eb   : > { %v2224_v14 = vmul.f32 1.442695, %v2212_v8  ;;  %v2215_v6 = vsub.f32 0.0, %v2207_v13  ;;  %v2197_v54 = vsub.f32 %v2181_v35, %v2189_v36  ;;  %v2191_v0 = vmul.f32 %v3559_v62, %v2175_v39 }
 0x2ec   : > { %v2228_v9 = vmul.f32 1.442695, %v2214_v11  ;;  %v2226_v17 = vmul.f32 1.442695, %v2213_v16  ;;  %v2198_v8 = vsub.f32 %v2182_v38, %v2190_v44 }
 0x2ed   : > { %3117 = vpow2.f32 %v2224_v14  ;;  %v2230_v18 = vmul.f32 1.442695, %v2215_v6  ;;  %v2199_v14 = vsub.f32 %v2183_v48, %v2191_v0 }
 0x2ee   : > { %3119 = vpow2.f32 %v2228_v9 }
 0x2ef   : > { %3121 = vpow2.f32 %v2226_v17 }
 0x2f0   : > { %3123 = vpow2.f32 %v2230_v18 }
 0x2f7   : > { %v3118_v19 = vpop.eup %3117 }
 0x2f8   : > { %v3120_v21 = vpop.eup %3119  ;;  %v2268_v15 = vadd.f32 1.0, %v3118_v19  ;;  %v2271_v27 = vmul.f32 -0.5, %v3118_v19  ;;  %v2274_v37 = vand.u32 2147483647, %v3118_v19 }
 0x2f9   : > { %v3122_v22 = vpop.eup %3121  ;;  %v2286_v23 = vadd.f32 1.0, %v3120_v21  ;;  %v2289_v29 = vmul.f32 -0.5, %v3120_v21  ;;  %v2292_v20 = vand.u32 2147483647, %v3120_v21 }
 0x2fa   : > { %v3124_v1 = vpop.eup %3123  ;;  %3125 = vlog2.f32 %v2268_v15  ;;  %v2277_v24 = vadd.f32 1.0, %v3122_v22  ;;  %v2280_v10 = vmul.f32 -0.5, %v3122_v22  ;;  %v2272_v33 = vadd.f32 1.0, %v2271_v27 }
 0x2fb   : > { %3127 = vlog2.f32 %v2286_v23  ;;  %v2295_v25 = vadd.f32 1.0, %v3124_v1  ;;  %v2298_v34 = vmul.f32 -0.5, %v3124_v1  ;;  %v2290_v41 = vadd.f32 1.0, %v2289_v29 }
 0x2fc   : > { %3129 = vlog2.f32 %v2277_v24  ;;  %v2281_v40 = vadd.f32 1.0, %v2280_v10  ;;  %v2283_v45 = vand.u32 2147483647, %v3122_v22  ;;  %v2273_v50 = vmul.f32 %v3118_v19, %v2272_v33 }
 0x2fd   : > { %3131 = vlog2.f32 %v2295_v25  ;;  %v2299_v51 = vadd.f32 1.0, %v2298_v34  ;;  %vm2275_vm4 = vcmp.lt.f32.partialorder %v2274_v37, 0.0004427343  ;;  %v2301_v56 = vand.u32 2147483647, %v3124_v1 }
 0x2fe   : > { %v2282_v60 = vmul.f32 %v3122_v22, %v2281_v40  ;;  %v2291_v61 = vmul.f32 %v3120_v21, %v2290_v41  ;;  %vm2284_vm5 = vcmp.lt.f32.partialorder %v2283_v45, 0.0004427343  ;;  %vm2293_vm6 = vcmp.lt.f32.partialorder %v2292_v20, 0.0004427343 }
 0x2ff   : > { %v2300_v5 = vmul.f32 %v3124_v1, %v2299_v51  ;;  %vm2302_vm7 = vcmp.lt.f32.partialorder %v2301_v56, 0.0004427343 }
 0x304   : > { %v3126_v42 = vpop.eup %3125 }
 0x305   : > { %v3128_v47 = vpop.eup %3127  ;;  %v2270_v49 = vmul.f32 0.6931472, %v3126_v42 }
 0x306   : > { %v3130_v52 = vpop.eup %3129  ;;  %v2288_v55 = vmul.f32 0.6931472, %v3128_v47 }
 0x307   : > { %v2276_v57 = vsel %vm2275_vm4, %v2273_v50, %v2270_v49  ;;  %v2279_v59 = vmul.f32 0.6931472, %v3130_v52  ;;  %v3132_v53 = vpop.eup %3131 }
 0x308   : > { %v2308_v63 = vadd.f32 %v2276_v57, %v2196_v43  ;;  %v2294_v3 = vsel %vm2293_vm6, %v2291_v61, %v2288_v55  ;;  %v2297_v4 = vmul.f32 0.6931472, %v3132_v53 }
 0x309   : > { %v2285_v2 = vsel %vm2284_vm5, %v2282_v60, %v2279_v59  ;;  %v2310_v16 = vadd.f32 %v2294_v3, %v2198_v8 }
 0x30a   : > { %v2309_v58 = vadd.f32 %v2285_v2, %v2197_v54  ;;  %v2315_v11 = vadd.f32 %v3543_v46, %v2308_v63  ;;  %v2303_v13 = vsel %vm2302_vm7, %v2300_v5, %v2297_v4 }
 0x30b   : > { %v2311_v6 = vadd.f32 %v2303_v13, %v2199_v14 }
 0x30c   : > { %v2316_v9 = vadd.f32 %v2315_v11, %v2309_v58 }
 0x30e   : > { %v2317_v62 = vadd.f32 %v2316_v9, %v2310_v16 }
 0x310   : > { %v2318_v17 = vadd.f32 %v2317_v62, %v2311_v6 }
 0x312   : > { %2319 = vadd.xlane.f32.xlu0 %v2318_v17 }
 0x39f   : > { %v2320_v18 = vpop.xlane.xlu0 %2319 }
 0x3a0   : > { %v2321_v19 = vrot.slane %v2320_v18, 4 }
 0x3a2   : > { %v2322_v21 = vadd.f32 %v2321_v19, %v2320_v18 }
 0x3a4   : > { %v2323_v15 = vrot.slane %v2322_v21, 2 }
 0x3a6   : > { %v2324_v22 = vadd.f32 %v2323_v15, %v2322_v21 }
 0x3a8   : > { %v2325_v7 = vrot.slane %v2324_v22, 1 }
 0x3aa   : > { %v2326_v23 = vadd.f32 %v2325_v7, %v2324_v22 }
 0x3ac   : > { %2703 = vpush %v2326_v23 }
 0x3dd   : > { %s2704_s12 = spop %2703 }
 0x3de   : > { %v2328_v46 = vstv %s2704_s12 }
 0x3df   : > { %2329 = vst [vmem:[%s241_s11] sm:$0xff] %v2328_v46 }
 0x3e0 PF: > { %s14_s15 = sadd.s32 1, %s3139_s15  }
 0x3e1   : > { %p11_p6 = scmp.ge.s32.totalorder %s14_s15, 6  }
 0x3e3   :  { %13 = sbr.rel (!%p11_p6) target bundleno = 1 (0x1), region = 72 }

</bundles_post_ra>
